<compile_context>
chip_gen: v7x
topology: tpu7x:2x2x1
jax: 0.10.0
libtpu: 0.0.40
codegen_flags: <defaults>
</compile_context>

<pallas_src>
import numpy as np
import jax
import jax.numpy as jnp
from jax.experimental import pallas as pl
from jax.experimental.pallas import tpu as pltpu


# --------------------------------------------------------------------------
# Kernels
# --------------------------------------------------------------------------
def _pad_value_kernel(x_ref, row_ref, o_ref):
    # x_ref: [T_TILE, N], row_ref: [1, (l+1)*N] (value replicated into every
    # slot), o_ref: [T_TILE, (l+1)*N].
    # One full-width aligned store of the pad row across the whole block, then
    # overwrite lanes [0:N) (lane offset 0 => no rotate, mask only on the
    # boundary vreg when N % 128 != 0).
    _, n = x_ref.shape
    o_ref[...] = jnp.broadcast_to(row_ref[...], o_ref.shape)
    o_ref[:, 0:n] = x_ref[...]


def _pad_target_kernel(x_ref, o_ref):
    # x_ref: [T_TILE, N], o_ref: [T_TILE, (l+1)*N]  (row replicated l+1 times)
    _, n = x_ref.shape
    l1 = o_ref.shape[-1] // n
    x = x_ref[...]
    if n % 128 == 0 and l1 <= 32:
        # Lane-aligned slot offsets: every store is an unmasked full-lane vst.
        for k in range(l1):
            o_ref[:, k * n:(k + 1) * n] = x
    else:
        # Misaligned N (or very large l): build the replicated row in vregs
        # (XLU lane placement, off the store slot) and do a single full-width
        # aligned store instead of l+1 masked/rotated partial stores.
        o_ref[...] = jnp.concatenate([x] * l1, axis=-1)


# --------------------------------------------------------------------------
# Tiling / sizing helpers
# --------------------------------------------------------------------------
def _sublane_multiple(dtype):
    # Native sublane tile: 8 rows f32, 16 rows bf16, 32 rows int8/fp8.
    itemsize = jnp.dtype(dtype).itemsize
    return 8 * max(1, 4 // max(itemsize, 1))


def _vmem_capacity_bytes():
    try:
        info = pltpu.get_tpu_info()
        cap = getattr(info, "vmem_capacity_bytes", None)
        if cap:
            return int(cap)
    except Exception:
        pass
    return 64 << 20  # conservative default: v7x per-TensorCore VMEM


def _pick_t_tile(B, T, N, L1, dtype, budget_bytes, min_total_blocks=8):
    """T tile: multiple of the dtype's sublane tile, within the VMEM budget,
    and small enough that B * ceil(T / t_tile) >= min_total_blocks when T
    allows it (pipelining overlap + work for both v7x TensorCores)."""
    sub = _sublane_multiple(dtype)
    if T <= sub:
        return T  # full-extent block dim is always legal
    itemsize = jnp.dtype(dtype).itemsize
    bytes_per_row = 2 * (1 + L1) * N * itemsize  # double-buffered in + out
    budget_rows = max(sub, budget_bytes // max(bytes_per_row, 1))
    want_t_blocks = max(1, -(-min_total_blocks // max(B, 1)))  # ceil
    cap_rows = max(sub, -(-T // want_t_blocks))                # ceil
    tile = min(T, budget_rows, cap_rows)
    tile = max(sub, (tile // sub) * sub)  # round down to sublane multiple
    return int(tile)


# --------------------------------------------------------------------------
# Wrapper
# --------------------------------------------------------------------------
def pad_coder(x, pad_length, target=False, value=None, t_tile=None):
    """x: [B, T, N] -> [B, T*(pad_length+1), N]."""
    assert pad_length > 0
    B, T, N = x.shape
    L1 = int(pad_length) + 1
    dtype = x.dtype
    itemsize = jnp.dtype(dtype).itemsize
    sub = _sublane_multiple(dtype)

    # Generation-aware VMEM sizing (≈64 MiB limit / 48 MiB budget on v5e/v6e,
    # ≈32 MiB limit / 24 MiB budget on v7x).
    vmem_limit = min(_vmem_capacity_bytes() // 2, 64 << 20)
    budget = (vmem_limit * 3) // 4

    if t_tile is None:
        t_tile = _pick_t_tile(B, T, N, L1, dtype, budget)
    else:
        t_tile = min(int(t_tile), T)
        assert t_tile == T or t_tile % sub == 0, (
            "explicit t_tile must be a multiple of the sublane tile or == T")

    grid = (B, pl.cdiv(T, t_tile))  # masked tail handles T % t_tile != 0

    x_spec = pl.BlockSpec((None, t_tile, N), lambda b, i: (b, i, 0))
    out_spec = pl.BlockSpec((None, t_tile, L1 * N), lambda b, i: (b, i, 0))
    out_shape = jax.ShapeDtypeStruct((B, T, L1 * N), dtype)

    cparams = pltpu.CompilerParams(
        dimension_semantics=("parallel", "parallel"),
        vmem_limit_bytes=int(vmem_limit),
    )
    cost = pl.CostEstimate(
        flops=0,
        transcendentals=0,
        bytes_accessed=int((1 + L1) * B * T * N * itemsize),
    )

    if target:
        out3 = pl.pallas_call(
            _pad_target_kernel,
            out_shape=out_shape,
            grid=grid,
            in_specs=[x_spec],
            out_specs=out_spec,
            compiler_params=cparams,
            cost_estimate=cost,
        )(x)
    else:
        # PyTorch path: ones[:] = value.unsqueeze(-1).repeat(1, T) => value: [N]
        assert value is not None, "non-target mode requires a value of shape [N]"
        # Precompute the full-width pad row once in the wrapper (lanes [0:N)
        # are overwritten by x inside the kernel, so their content is moot).
        row = jnp.tile(jnp.asarray(value, dtype=dtype).reshape(1, N), (1, L1))
        row_spec = pl.BlockSpec((1, L1 * N), lambda b, i: (0, 0))
        out3 = pl.pallas_call(
            _pad_value_kernel,
            out_shape=out_shape,
            grid=grid,
            in_specs=[x_spec, row_spec],
            out_specs=out_spec,
            compiler_params=cparams,
            cost_estimate=cost,
        )(x, row)

    # [B, T, (l+1)*N] -> [B, T*(l+1), N]: contiguous split, pure metadata glue.
    return out3.reshape(B, T * L1, N)


# --------------------------------------------------------------------------
# Pure-JAX reference (transliteration of PadCoder.code) for verification
# --------------------------------------------------------------------------
def ref_pad_coder(x, l, target=False, value=None):
    B, T, N = x.shape
    xt = jnp.transpose(x, (0, 2, 1))                     # [B, N, T]
    if target:
        pad = jnp.broadcast_to(xt[..., None], (B, N, T, l))
    else:
        v = jnp.broadcast_to(value[:, None], (N, T))     # [N, T]
        ones = jnp.broadcast_to(v[None], (B, N, T))
        pad = jnp.broadcast_to(ones[..., None], (B, N, T, l))
    xn = jnp.concatenate([xt[..., None], pad], axis=-1)  # [B, N, T, l+1]
    xn = xn.reshape(B, N, T * (l + 1))
    return jnp.transpose(xn, (0, 2, 1))                  # [B, T*(l+1), N]


if __name__ == "__main__":
    key = jax.random.PRNGKey(0)

    # Case 1: lane-dense N (multiple of 128), multi-step grid, aligned path.
    # Case 2: small / non-128 N, auto tile selection, concat fast path.
    # Case 3: T not divisible by the tile -> cdiv grid with masked tail.
    cases = [
        dict(B=2, T=16, N=128, l=3, t_tile=8),
        dict(B=2, T=8, N=32, l=3, t_tile=None),
        dict(B=2, T=12, N=128, l=3, t_tile=8),
    ]

    for c in cases:
        B, T, N, l = c["B"], c["T"], c["N"], c["l"]
        kx, kv = jax.random.split(jax.random.fold_in(key, 1000 * T + N))
        x = jax.random.normal(kx, (B, T, N), dtype=jnp.float32)
        value = jax.random.normal(kv, (N,), dtype=jnp.float32)

        out_v = jax.block_until_ready(
            pad_coder(x, l, target=False, value=value, t_tile=c["t_tile"]))
        out_t = jax.block_until_ready(
            pad_coder(x, l, target=True, t_tile=c["t_tile"]))

        assert out_v.shape == (B, T * (l + 1), N)
        assert out_t.shape == (B, T * (l + 1), N)

        np.testing.assert_allclose(
            np.asarray(out_v), np.asarray(ref_pad_coder(x, l, False, value)),
            rtol=0, atol=0)
        np.testing.assert_allclose(
            np.asarray(out_t), np.asarray(ref_pad_coder(x, l, True)),
            rtol=0, atol=0)

    print("KERNEL_OK")
</pallas_src>

<mosaic_0001>
module attributes {stable_mosaic.version = 11 : i64} {
  func.func @_pad_value_kernel(%arg0: i32, %arg1: i32, %arg2: memref<1x8x128xf32, #tpu.memory_space<vmem>>, %arg3: memref<1x512xf32, #tpu.memory_space<vmem>>, %arg4: memref<1x8x512xf32, #tpu.memory_space<vmem>>) attributes {dimension_semantics = [#tpu.dimension_semantics<parallel>, #tpu.dimension_semantics<parallel>], iteration_bounds = array<i64: 2, 2>, scalar_prefetch = 0 : i64, scratch_operands = 0 : i64, tpu.core_type = #tpu.core_type<tc>, window_params = [{transform_indices = @transform_0, window_bounds = array<i64: 1, 8, 128>}, {pipeline_mode = #tpu.pipeline_mode<synchronous>, transform_indices = @transform_1, window_bounds = array<i64: 1, 512>}, {transform_indices = @transform_2, window_bounds = array<i64: 1, 8, 512>}]} {
    %c0 = arith.constant 0 : index
    %c0_0 = arith.constant 0 : index
    %0 = vector.load %arg3[%c0, %c0_0] : memref<1x512xf32, #tpu.memory_space<vmem>>, vector<1x512xf32>
    %1 = vector.shape_cast %0 : vector<1x512xf32> to vector<1x512xf32>
    %2 = vector.broadcast %1 : vector<1x512xf32> to vector<8x512xf32>
    %c0_1 = arith.constant 0 : index
    %c0_2 = arith.constant 0 : index
    %c0_3 = arith.constant 0 : index
    %3 = vector.load %arg4[%c0_1, %c0_2, %c0_3] : memref<1x8x512xf32, #tpu.memory_space<vmem>>, vector<1x8x512xf32>
    %4 = vector.shape_cast %3 : vector<1x8x512xf32> to vector<8x512xf32>
    %5 = vector.shape_cast %2 : vector<8x512xf32> to vector<1x8x512xf32>
    tpu.vector_store %arg4[%c0_1, %c0_2, %c0_3], %5 {strides = array<i32>} : memref<1x8x512xf32, #tpu.memory_space<vmem>>, vector<1x8x512xf32>,
    %c0_4 = arith.constant 0 : index
    %c0_5 = arith.constant 0 : index
    %c0_6 = arith.constant 0 : index
    %6 = vector.load %arg2[%c0_4, %c0_5, %c0_6] : memref<1x8x128xf32, #tpu.memory_space<vmem>>, vector<1x8x128xf32>
    %7 = vector.shape_cast %6 : vector<1x8x128xf32> to vector<8x128xf32>
    %c0_7 = arith.constant 0 : index
    %c0_8 = arith.constant 0 : index
    %c0_9 = arith.constant 0 : index
    %8 = vector.load %arg4[%c0_7, %c0_8, %c0_9] : memref<1x8x512xf32, #tpu.memory_space<vmem>>, vector<1x8x128xf32>
    %9 = vector.shape_cast %8 : vector<1x8x128xf32> to vector<8x128xf32>
    %10 = vector.shape_cast %7 : vector<8x128xf32> to vector<1x8x128xf32>
    tpu.vector_store %arg4[%c0_7, %c0_8, %c0_9], %10 {strides = array<i32>} : memref<1x8x512xf32, #tpu.memory_space<vmem>>, vector<1x8x128xf32>,
    return
  }
  func.func @transform_0(%arg0: i32, %arg1: i32) -> (i32, i32, i32) {
    %c0_i32 = arith.constant 0 : i32
    %c0_i32_0 = arith.constant 0 : i32
    return %arg0, %arg1, %c0_i32 : i32, i32, i32
  }
  func.func @transform_1(%arg0: i32, %arg1: i32) -> (i32, i32) {
    %c0_i32 = arith.constant 0 : i32
    %c0_i32_0 = arith.constant 0 : i32
    %c0_i32_1 = arith.constant 0 : i32
    return %c0_i32, %c0_i32_0 : i32, i32
  }
  func.func @transform_2(%arg0: i32, %arg1: i32) -> (i32, i32, i32) {
    %c0_i32 = arith.constant 0 : i32
    %c0_i32_0 = arith.constant 0 : i32
    return %arg0, %arg1, %c0_i32 : i32, i32, i32
  }
}

</mosaic_0001>

<bundles_post_ra>
// kernel: tpu_custom_call.1
= control target key start
LH: loop header
LB: loop body
LE: loop exit
PB: predicated region body
PF: predicated region fallthrough
CT: control target
= control target key end

     0   :  { %s857_s0 = inlined_call_operand.hbm [shape: f32[2,16,128], index: 0, kind: input, shape index: {}]   ;;  %s858_s1 = inlined_call_operand.hbm [shape: f32[1,512], index: 1, kind: input, shape index: {}]   ;;  %s859_s2 = inlined_call_operand.hbm [shape: f32[2,16,512], index: 2, kind: output, shape index: {}]  }
   0x1   :  { %866 = sst [smem:[#allocation13_spill]] %s858_s1 }
   0x2   :  { %7 = vsyncpa [#allocation3], 0 }
   0x3   :  { %9 = vsyncpa [#allocation3 + $0x1], 0 }
   0x4   :  { %10 = vsyncpa [#allocation6], 0 }
   0x5   :  { %11 = vsyncpa [#allocation4], 0 }
   0x6   :  { %13 = vsyncpa [#allocation4 + $0x1], 0  ;;  %s618_s9 = smov 0   ;;  %s620_s10 = smov 0  }
   0x7   :  { %s622_s11 = smov 0   ;;  %s624_s12 = smov 0  }
   0x8   :  { %s626_s13 = smov 0   ;;  %s628_s14 = smov 0  }
   0x9   :  { %s630_s15 = smov 0   ;;  %s632_s16 = smov 0  }
   0xa LB: > { %s331_s17 = sadd.s32 4294967295, %s598_s16   ;;  %s332_s18 = sadd.s32 4294967294, %s598_s16   ;;  %s598_s16 = sphi %s632_s16, %s19_s16   ;;  %s594_s15 = sphi %s630_s15, %s892_s15   ;;  %s590_s14 = sphi %s628_s14, %s891_s14   ;;  %s586_s13 = sphi %s626_s13, %s890_s13   ;;  %s582_s12 = sphi %s624_s12, %s889_s12   ;;  %s578_s11 = sphi %s622_s11, %s888_s11   ;;  %s574_s10 = sphi %s620_s10, %s887_s10   ;;  %s570_s9 = sphi %s618_s9, %s886_s9  }
   0xb   : > { %p53_p0 = scmp.ne.s32.totalorder %s574_s10, %s570_s9  ;;  %p662_p1 = scmp.eq.s32.totalorder %s331_s17, 0 }
   0xc   : > { %p666_p2 = scmp.eq.s32.totalorder %s331_s17, 3  ;;  %p106_p3 = scmp.eq.s32.totalorder %s332_s18, 3 }
   0xd   : > { %s867_s19 = scalar_select %p662_p1, 1, 0 }
   0xe   : > { %s868_s20 = scalar_select %p666_p2, 1, 0 }
   0xf   : > { %p672_p4 = por %p662_p1, %p53_p0  ;;  %p333_p5 = scmp.ge.s32.totalorder %s598_s16, 1 }
  0x10   : > { %p677_p6 = por %p106_p3, %p53_p0  ;;  %p113_p7 = scmp.lt.s32.totalorder %s598_s16, 5 }
  0x11   : > { %s869_s21 = scalar_select %p672_p4, 1, 0 }
  0x12   : > { %s870_s22 = scalar_select %p677_p6, 1, 0 }
  0x13   : > { %p682_p8 = pnand %p333_p5, %p113_p7  ;;  %s600_s24 = smov [#allocation5]  }
  0x14   : > { %871 = sst [smem:[#allocation11_spill]] %s870_s22  ;;  %s126_s25 = sshll.u32 %s600_s24, 4  ;;  %s127_s25 = int_to_ptr.vmem [resolvable:$true] %s126_s25 }
  0x15   : > { %s872_s23 = scalar_select %p682_p8, 1, 0 }
  0x16   : > { %p357_p9 = pneg %p682_p8  ;;  %s28_s27 = sadd.s32 1, %s590_s14 }
  0x17   : > { %s874_s1 = sld [smem:[#allocation13_spill]] }
  0x18   : > { %p690_p10 = pnand %p357_p9, %p662_p1 }
  0x1a   : > { %p440_p12 = pneg %p690_p10 }
  0x1d   : > { %s438_s30 = scalar_lea.hbm %s874_s1, 64 }
  0x1e   : > { %p439_p11 = scmp.ne.s32.totalorder %s874_s1, %s438_s30  ;;  %p445_p3 = scmp.lt.u32.totalorder %s438_s30, %s874_s1 }
  0x20   : > { %p441_p13 = pnand %p440_p12, %p439_p11 }
  0x22   : > { %p442_p0 = pneg %p441_p13 }
  0x24   : > { %p447_p5 = pnand %p445_p3, %p442_p0 }
  0x26   : > { %450 = shalt.err (!%p447_p5)
}
  0x27   : > { %s451_s7 = scalar_lea.vmem %s127_s25, 64  ;;  %p459_p1 = scmp.lt.s32.totalorder %s127_s25, %s127_s25 }
  0x28   : > { %p452_p7 = scmp.ne.s32.totalorder %s127_s25, %s451_s7  ;;  %p460_p4 = scmp.lt.s32.totalorder %s451_s7, %s451_s7 }
  0x2a   : > { %p454_p9 = pnand %p452_p7, %p440_p12  ;;  %p461_p8 = por %p460_p4, %p459_p1 }
  0x2c   : > { %p455_p6 = pneg %p454_p9 }
  0x2e   : > { %p462_p2 = pnand %p461_p8, %p455_p6 }
  0x30   : > { %465 = shalt.err (!%p462_p2)
}
  0x31   : > { %360 = dma.hbm_to_vmem [thread:$0]  (!%p690_p10), %s874_s1, 64, %s127_s25, [#allocation6]  }
  0x32   : > { %p29_p1 = scmp.ge.s32.totalorder %s28_s27, 2  ;;  %s31_s18 = sadd.s32 1, %s594_s15 }
  0x33   : > { %s40_s24 = sadd.s32 1, %s578_s11  ;;  %p47_p2 = scmp.ne.s32.totalorder %s578_s11, %s574_s10 }
  0x34   : > { %s894_s27 = smov (%p29_p1, %s28_s27), 0  ;;  %s896_s18 = smov (!%p29_p1, %s31_s18), %s594_s15 }
  0x35   : > { %875 = sst [smem:[#allocation12_spill]] %s894_s27  ;;  %s36_s26 = ssub.s32 %s590_s14, %s894_s27 }
  0x36   : > { %p48_p4 = scmp.eq.s32.totalorder %s598_s16, 0  ;;  %p33_p6 = scmp.ge.s32.totalorder %s896_s18, 2 }
  0x37   : > { %p876_p8 = scmp.ne.s32.totalorder %s868_s20, 0  ;;  %p370_p12 = scmp.lt.s32.totalorder %s598_s16, 4 }
  0x38   : > { %p727_p10 = por %p48_p4, %p47_p2  ;;  %s898_s18 = smov (%p33_p6, %s896_s18), 0 }
  0x39   : > { %p723_p11 = por %p876_p8, %p47_p2  ;;  %s137_s29 = sand.u32 1, %s578_s11  }
  0x3a   : > { %s337_s30 = sshll.u32 %s594_s15, 1  ;;  %s35_s3 = ssub.s32 %s594_s15, %s898_s18 }
  0x3b   : > { %s37_s4 = sor.u32 %s36_s26, %s35_s3  ;;  %s336_s5 = sshll.u32 %s137_s29, 3 }
  0x3c   : > { %p38_p13 = scmp.eq.s32.totalorder %s37_s4, 0  ;;  %s146_s20 = sadd.s32 %s590_s14, %s337_s30 }
  0x3d   : > { %s141_s6 = scalar_lea.vmem [#allocation2], %s336_s5  ;;  %s338_s17 = sshll.u32 %s146_s20, 7 }
  0x3e   : > { %s150_s7 = sshll.u32 %s141_s6, 4  ;;  %s747_s22 = scalar_lea.hbm %s857_s0, %s338_s17  ;;  %s742_s7 = int_to_ptr.vmem [resolvable:$true] %s150_s7 }
  0x3f   : > { %s740_s8 = scalar_select %p38_p13, %s578_s11, %s40_s24  }
  0x40   : > { %p753_p0 = pnand %p370_p12, %p727_p10  ;;  %s138_s24 = scalar_lea.sflag [#allocation3], %s137_s29 }
  0x41   : > { %s466_s30 = scalar_lea.hbm %s747_s22, 128  ;;  %s471_s25 = scalar_lea.hbm %s857_s0, 512 }
  0x42   : > { %p467_p3 = scmp.ne.s32.totalorder %s747_s22, %s466_s30  ;;  %p468_p5 = pneg %p753_p0 }
  0x43   : > { %p472_p1 = scmp.lt.u32.totalorder %s747_s22, %s857_s0  ;;  %p473_p2 = scmp.lt.u32.totalorder %s471_s25, %s466_s30 }
  0x44   : > { %p469_p7 = pnand %p468_p5, %p467_p3  ;;  %p475_p6 = scmp.lt.u32.totalorder %s466_s30, %s747_s22 }
  0x45   : > { %p474_p4 = por %p473_p2, %p472_p1 }
  0x46   : > { %p470_p9 = pneg %p469_p7 }
  0x47   : > { %p476_p8 = por %p475_p6, %p474_p4 }
  0x49   : > { %p477_p10 = pnand %p476_p8, %p470_p9 }
  0x4b   : > { %480 = shalt.err (!%p477_p10)
}
  0x4c   : > { %s481_s29 = scalar_lea.vmem %s742_s7, 128  ;;  %s601_s5 = smov [#allocation2]  }
  0x4d   : > { %p482_p12 = scmp.ne.s32.totalorder %s742_s7, %s481_s29  ;;  %s486_s20 = sshll.u32 %s601_s5, 4  ;;  %s487_s20 = int_to_ptr.vmem [resolvable:$false] %s486_s20 }
  0x4e   : > { %s488_s6 = scalar_lea.vmem %s487_s20, 256  ;;  %p489_p7 = scmp.lt.s32.totalorder %s742_s7, %s487_s20 }
  0x4f   : > { %p484_p13 = pnand %p482_p12, %p468_p5  ;;  %p490_p1 = scmp.lt.s32.totalorder %s488_s6, %s481_s29 }
  0x51   : > { %p485_p3 = pneg %p484_p13  ;;  %p491_p2 = por %p490_p1, %p489_p7 }
  0x53   : > { %p492_p4 = pnand %p491_p2, %p485_p3 }
  0x55   : > { %495 = shalt.err (!%p492_p4)
}
  0x56   : > { %364 = dma.hbm_to_vmem [thread:$0]  (!%p753_p0), %s747_s22, 128, %s742_s7, %s138_s24  }
  0x57   : > { %p880_p9 = scmp.ne.s32.totalorder %s872_s23, 0 }
  0x58   : > { %s785_s17 = sand.u32 (!%p880_p9), 1, %s574_s10   ;;  %p881_p5 = scmp.ne.s32.totalorder (!%p880_p9), %s869_s21, 0 }
  0x59   : > { %159 = sbr.rel (%p880_p9) target bundleno = 127 (0x7f), region = 28  ;;  %s340_s30 = sshll.u32 (!%p880_p9), %s785_s17, 3 }
  0x5a   : > { %s162_s1 = scalar_lea.sflag (!%p880_p9), [#allocation3], %s785_s17  ;;  %s165_s27 = scalar_lea.vmem (!%p880_p9), [#allocation2], %s340_s30 }
  0x60   : > { %557 = dma.done.wait (%p881_p5), %s162_s1, 128  }
  0x61   : > { %559 = vsyncadd (%p881_p5), %s162_s1, 4294967168  ;;  %p882_p6 = scmp.ne.s32.totalorder %s867_s19, 0 }
  0x63   : > { %561 = dma.done.wait (%p882_p6), [#allocation6], 64  }
  0x64   : > { %563 = vsyncadd (%p882_p6), [#allocation6], 4294967232  ;;  %s342_s22 = sshll.u32 %s785_s17, 5  ;;  %v192_v0 = vlaneseq  ;;  %s344_s23 = sshll.u32 %s582_s12, 2  ;;  %v190_v5 = vld [vmem:[#allocation5] sm:$0xf] }
  0x65   : > { %s345_s7 = sshll.u32 %s586_s13, 3  ;;  %s189_s24 = scalar_lea.vmem [#allocation7], %s342_s22  ;;  %v216_v6 = vld [vmem:[%s165_s27] sm:$0xff] }
  0x66   : > { %v193_v1 = vshrl.u32 %v192_v0, 7  ;;  %s231_s26 = sadd.s32 %s345_s7, %s344_s23  ;;  %s235_s25 = sshll.u32 %s189_s24, 4  ;;  %217 = vst [vmem:[%s189_s24] sm:$0xff] %v216_v6  ;;  %s805_s25 = int_to_ptr.vmem [resolvable:$true] %s235_s25 }
  0x67   : > { %s346_s21 = sshll.u32 %s231_s26, 7  ;;  %s219_s13 = scalar_lea.sflag [#allocation4], %s785_s17 }
  0x68   : > { %v198_v2 = vsub.s32 1, %v193_v1  ;;  %v202_v3 = vsub.s32 2, %v193_v1  ;;  %v206_v4 = vsub.s32 3, %v193_v1  ;;  %s803_s12 = scalar_lea.hbm %s859_s2, %s346_s21  ;;  %s496_s4 = scalar_lea.vmem %s805_s25, 512 }
  0x69   : > { %p497_p0 = scmp.ne.s32.totalorder %s805_s25, %s496_s4  ;;  %s602_s29 = smov [#allocation7]  }
  0x6a   : > { %v199_v7 = vrot.slane %v190_v5, %v198_v2  ;;  %v203_v8 = vrot.slane %v190_v5, %v202_v3  ;;  %v207_v9 = vrot.slane %v190_v5, %v206_v4  ;;  %s500_s5 = sshll.u32 %s602_s29, 4  ;;  %s501_s5 = int_to_ptr.vmem [resolvable:$false] %s500_s5 }
  0x6b   : > { %p498_p8 = pnand %p497_p0, %p723_p11  ;;  %s502_s20 = scalar_lea.vmem %s501_s5, 1024 }
  0x6c   : > { %213 = vst [vmem:[%s189_s24 + $0x8] sm:$0xff] %v199_v7  ;;  %214 = vst [vmem:[%s189_s24 + $0x10] sm:$0xff] %v203_v8  ;;  %p503_p12 = scmp.lt.s32.totalorder %s805_s25, %s501_s5  ;;  %p504_p13 = scmp.lt.s32.totalorder %s502_s20, %s496_s4 }
  0x6d   : > { %215 = vst [vmem:[%s189_s24 + $0x18] sm:$0xff] %v207_v9  ;;  %p499_p10 = pneg %p498_p8 }
  0x6e   : > { %p505_p3 = por %p504_p13, %p503_p12 }
  0x70   : > { %p506_p7 = pnand %p505_p3, %p499_p10 }
  0x72   : > { %509 = shalt.err (!%p506_p7)
}
  0x73   : > { %s510_s6 = scalar_lea.hbm %s803_s12, 512  ;;  %s514_s1 = scalar_lea.hbm %s859_s2, 2048 }
  0x74   : > { %p511_p1 = scmp.ne.s32.totalorder %s803_s12, %s510_s6  ;;  %p515_p9 = scmp.lt.u32.totalorder %s803_s12, %s859_s2 }
  0x75   : > { %p516_p5 = scmp.lt.u32.totalorder %s514_s1, %s510_s6  ;;  %p518_p0 = scmp.lt.u32.totalorder %s510_s6, %s803_s12 }
  0x76   : > { %p512_p2 = pnand %p511_p1, %p723_p11 }
  0x77   : > { %p517_p6 = por %p516_p5, %p515_p9 }
  0x78   : > { %p513_p4 = pneg %p512_p2 }
  0x79   : > { %p519_p8 = por %p518_p0, %p517_p6 }
  0x7b   : > { %p520_p10 = pnand %p519_p8, %p513_p4 }
  0x7d   : > { %523 = shalt.err (!%p520_p10)
}
  0x7e   : > { %355 = dma.vmem_to_hbm [thread:$0]  (%p723_p11), %s805_s25, 512, %s803_s12, %s219_s13  }
  0x7f PF: > { %s883_s23 = sld [smem:[#allocation11_spill]]  ;;  %p372_p12 = scmp.ge.s32.totalorder %s598_s16, 2 }
  0x80   : > { %s247_s7 = sand.u32 1, %s570_s9  }
  0x81   : > { %s248_s26 = scalar_lea.sflag [#allocation4], %s247_s7 }
  0x85   : > { %p884_p13 = scmp.ne.s32.totalorder %s883_s23, 0 }
  0x87   : > { %p366_p3 = pnand %p372_p12, %p884_p13 }
  0x89   : > { %565 = dma.done.wait (!%p366_p3), %s248_s26, 512  }
  0x8a   : > { %567 = vsyncadd (!%p366_p3), %s248_s26, 4294966784  ;;  %s19_s16 = sadd.s32 1, %s598_s16   ;;  %s885_s28 = sld [smem:[#allocation12_spill]] }
  0x8b   : > { %p16_p7 = scmp.ge.s32.totalorder %s19_s16, 6   ;;  %s886_s9 = smov %s574_s10 }
  0x8c   : > { %s887_s10 = smov %s578_s11  ;;  %s888_s11 = smov %s740_s8 }
  0x8d   : > { %s889_s12 = smov %s590_s14  ;;  %s890_s13 = smov %s594_s15 }
  0x8e   : > { %s892_s15 = smov %s898_s18  ;;  %18 = sbr.rel (!%p16_p7) target bundleno = 10 (0xa), region = 77 }
  0x90   : > { %s891_s14 = smov %s885_s28 }
  0x95   :  { %253 = vsyncpa [#allocation3], 1 }
  0x96   :  { %255 = vsyncpa [#allocation3 + $0x1], 1 }
  0x97   :  { %256 = vsyncpa [#allocation6], 1 }
  0x98   :  { %257 = vsyncpa [#allocation4], 1 }
  0x99   :  { %259 = vsyncpa [#allocation4 + $0x1], 1 }

</bundles_post_ra>
